<compile_context>
chip_gen: v7x
topology: tpu7x:2x2x1
jax: 0.10.0
libtpu: 0.0.40
codegen_flags: <defaults>
</compile_context>

<pallas_src>
import functools

import jax
import jax.numpy as jnp
from jax.experimental import pallas as pl
from jax.experimental.pallas import tpu as pltpu


# ----------------------------- Pallas kernel ------------------------------- #

def _gap_kernel(x_ref, o_ref, acc_ref, *, inv_k):
    """Row-sum reduction over K tiles, finalized to a mean.

    x_ref:   (tm, tk) input tile
    o_ref:   (tm, 1)  output tile (same block for every K step -> resident)
    acc_ref: (tm, 1)  f32 VMEM accumulator, persists across grid steps
    """
    j = pl.program_id(1)  # reduction (K) axis, last grid dim

    @pl.when(j == 0)
    def _():
        acc_ref[...] = jnp.zeros_like(acc_ref)

    # Partial row sums for this K tile (cross-lane reduce -> XLU slot;
    # the kernel is HBM-read bound so this is effectively free).
    acc_ref[...] += jnp.sum(x_ref[...].astype(jnp.float32), axis=-1,
                            keepdims=True)

    @pl.when(j == pl.num_programs(1) - 1)
    def _():
        o_ref[...] = (acc_ref[...] * inv_k).astype(o_ref.dtype)


# ----------------------------- wrapper / glue ------------------------------- #

def _round_up(x, m):
    return ((x + m - 1) // m) * m


@jax.jit
def global_avg_pool2d(x):
    """Pallas GlobalAvgPool2d: (N, C, H, W) -> (N, C, 1, 1)."""
    N, C, H, W = x.shape
    M, K = N * C, H * W

    # NCHW is contiguous as (N*C, H*W): this reshape is layout-free.
    xm = x.reshape(M, K)

    # Tile sizes: multiples of (8, 128), capped so a double-buffered input
    # block stays far under v7x's 64 MiB VMEM (512*2048*4B = 4 MiB/block).
    tm = min(512, _round_up(M, 8))
    tk = min(2048, _round_up(K, 128))

    Mp = _round_up(M, tm)
    Kp = _round_up(K, tk)
    if (Mp, Kp) != (M, K):
        # Zero padding does not perturb the sum; we divide by the true K.
        xm = jnp.pad(xm, ((0, Mp - M), (0, Kp - K)))

    grid = (Mp // tm, Kp // tk)

    out = pl.pallas_call(
        functools.partial(_gap_kernel, inv_k=1.0 / float(K)),
        out_shape=jax.ShapeDtypeStruct((Mp, 1), x.dtype),
        grid=grid,
        in_specs=[pl.BlockSpec((tm, tk), lambda i, j: (i, j))],
        out_specs=pl.BlockSpec((tm, 1), lambda i, j: (i, 0)),
        scratch_shapes=[pltpu.VMEM((tm, 1), jnp.float32)],
        compiler_params=pltpu.CompilerParams(
            # M tiles shard across TensorCores (v7x megacore); the K
            # reduction axis carries the accumulator and must be serial.
            dimension_semantics=("parallel", "arbitrary"),
            vmem_limit_bytes=64 * 1024 * 1024,
        ),
    )(xm)

    return out[:M].reshape(N, C, 1, 1)


# --------------------------- pure-JAX reference ----------------------------- #

def global_avg_pool2d_reference(x):
    return jnp.mean(x, axis=(2, 3), keepdims=True)


# ----------------------------------- main ----------------------------------- #

if __name__ == "__main__":
    key = jax.random.PRNGKey(0)
    N, C, H, W = 2, 4, 16, 16
    x = jax.random.normal(key, (N, C, H, W), jnp.float32)

    out = global_avg_pool2d(x)
    out = jax.block_until_ready(out)

    ref = global_avg_pool2d_reference(x)
    assert out.shape == (N, C, 1, 1), out.shape
    assert jnp.allclose(out, ref, atol=1e-5, rtol=1e-5), float(
        jnp.max(jnp.abs(out - ref)))

    print("KERNEL_OK")
</pallas_src>

<mosaic_0001>
module attributes {stable_mosaic.version = 11 : i64} {
  func.func @_gap_kernel(%arg0: i32, %arg1: i32, %arg2: memref<8x256xf32, #tpu.memory_space<vmem>>, %arg3: memref<8x1xf32, #tpu.memory_space<vmem>>, %arg4: memref<8x1xf32, #tpu.memory_space<vmem>>) attributes {dimension_semantics = [#tpu.dimension_semantics<parallel>, #tpu.dimension_semantics<arbitrary>], iteration_bounds = array<i64: 1, 1>, scalar_prefetch = 0 : i64, scratch_operands = 1 : i64, tpu.core_type = #tpu.core_type<tc>, window_params = [{transform_indices = @transform_0, window_bounds = array<i64: 8, 256>}, {transform_indices = @transform_1, window_bounds = array<i64: 8, 1>}]} {
    %c0_i32 = arith.constant 0 : i32
    %0 = arith.cmpi eq, %arg1, %c0_i32 : i32
    %1 = arith.extui %0 : i1 to i32
    %c0_i32_0 = arith.constant 0 : i32
    %2 = arith.cmpi ne, %1, %c0_i32_0 : i32
    scf.if %2 {
      %cst_8 = arith.constant 0.000000e+00 : f32
      %12 = vector.broadcast %cst_8 : f32 to vector<8x1xf32>
      %c0_9 = arith.constant 0 : index
      %c0_10 = arith.constant 0 : index
      %13 = vector.load %arg4[%c0_9, %c0_10] : memref<8x1xf32, #tpu.memory_space<vmem>>, vector<8x1xf32>
      tpu.vector_store %arg4[%c0_9, %c0_10], %12 {strides = array<i32>} : memref<8x1xf32, #tpu.memory_space<vmem>>, vector<8x1xf32>,
    } else {
    }
    %c0 = arith.constant 0 : index
    %c0_1 = arith.constant 0 : index
    %3 = vector.load %arg4[%c0, %c0_1] : memref<8x1xf32, #tpu.memory_space<vmem>>, vector<8x1xf32>
    %c0_2 = arith.constant 0 : index
    %c0_3 = arith.constant 0 : index
    %4 = vector.load %arg2[%c0_2, %c0_3] : memref<8x256xf32, #tpu.memory_space<vmem>>, vector<8x256xf32>
    %cst = arith.constant dense<0.000000e+00> : vector<8xf32>
    %5 = vector.multi_reduction <add>, %4, %cst [1] : vector<8x256xf32> to vector<8xf32>
    %6 = vector.shape_cast %5 : vector<8xf32> to vector<8x1xf32>
    %7 = arith.addf %3, %6 : vector<8x1xf32>
    %c0_4 = arith.constant 0 : index
    %c0_5 = arith.constant 0 : index
    %8 = vector.load %arg4[%c0_4, %c0_5] : memref<8x1xf32, #tpu.memory_space<vmem>>, vector<8x1xf32>
    tpu.vector_store %arg4[%c0_4, %c0_5], %7 {strides = array<i32>} : memref<8x1xf32, #tpu.memory_space<vmem>>, vector<8x1xf32>,
    %c0_i32_6 = arith.constant 0 : i32
    %9 = arith.cmpi eq, %arg1, %c0_i32_6 : i32
    %10 = arith.extui %9 : i1 to i32
    %c0_i32_7 = arith.constant 0 : i32
    %11 = arith.cmpi ne, %10, %c0_i32_7 : i32
    scf.if %11 {
      %c0_8 = arith.constant 0 : index
      %c0_9 = arith.constant 0 : index
      %12 = vector.load %arg4[%c0_8, %c0_9] : memref<8x1xf32, #tpu.memory_space<vmem>>, vector<8x1xf32>
      %cst_10 = arith.constant 3.906250e-03 : f32
      %13 = vector.broadcast %cst_10 : f32 to vector<8x1xf32>
      %14 = arith.mulf %12, %13 : vector<8x1xf32>
      %c0_11 = arith.constant 0 : index
      %c0_12 = arith.constant 0 : index
      %15 = vector.load %arg3[%c0_11, %c0_12] : memref<8x1xf32, #tpu.memory_space<vmem>>, vector<8x1xf32>
      tpu.vector_store %arg3[%c0_11, %c0_12], %14 {strides = array<i32>} : memref<8x1xf32, #tpu.memory_space<vmem>>, vector<8x1xf32>,
    } else {
    }
    return
  }
  func.func @transform_0(%arg0: i32, %arg1: i32) -> (i32, i32) {
    %c0_i32 = arith.constant 0 : i32
    return %arg0, %arg1 : i32, i32
  }
  func.func @transform_1(%arg0: i32, %arg1: i32) -> (i32, i32) {
    %c0_i32 = arith.constant 0 : i32
    %c0_i32_0 = arith.constant 0 : i32
    return %arg0, %c0_i32 : i32, i32
  }
}

</mosaic_0001>

<bundles_post_ra>
// kernel: global_avg_pool2d.1
= control target key start
LH: loop header
LB: loop body
LE: loop exit
PB: predicated region body
PF: predicated region fallthrough
CT: control target
= control target key end

     0   :  { %6 = vsyncpa [#allocation4], 0  ;;  %s148_s0 = inlined_call_operand.hbm [shape: f32[8,256], index: 0, kind: input, shape index: {}]   ;;  %s149_s1 = inlined_call_operand.hbm [shape: f32[8,1], index: 1, kind: output, shape index: {}]  }
   0x1   :  { %7 = vsyncpa [#allocation5], 0  ;;  %s108_s6 = smov [#allocation3]   ;;  %s60_s10 = scalar_lea.hbm %s148_s0, 256 }
   0x2   :  { %s14_s7 = sshll.u32 %s108_s6, 4  ;;  %p61_p0 = scmp.ne.s32.totalorder %s148_s0, %s60_s10  ;;  %s15_s7 = int_to_ptr.vmem [resolvable:$true] %s14_s7 }
   0x3   :  { %p64_p1 = scmp.lt.u32.totalorder %s60_s10, %s148_s0 }
   0x5   :  { %p66_p2 = pnand %p64_p1, %p61_p0 }
   0x7   :  { %69 = shalt.err (!%p66_p2)
}
   0x8   :  { %s70_s15 = scalar_lea.vmem %s15_s7, 256  ;;  %p75_p4 = scmp.lt.s32.totalorder %s15_s7, %s15_s7 }
   0x9   :  { %p71_p3 = scmp.ne.s32.totalorder %s15_s7, %s70_s15  ;;  %p76_p5 = scmp.lt.s32.totalorder %s70_s15, %s70_s15 }
   0xb   :  { %p77_p6 = por %p76_p5, %p75_p4 }
   0xd   :  { %p78_p7 = pnand %p77_p6, %p71_p3 }
   0xf   :  { %81 = shalt.err (!%p78_p7)
}
  0x10   :  { %17 = dma.hbm_to_vmem [thread:$0]  %s148_s0, 256, %s15_s7, [#allocation4]  }
  0x11   :  { %104 = dma.done.wait [#allocation4], 256  }
  0x12   :  { %105 = vsyncadd [#allocation4], 4294967040  ;;  %vm25_vm0 = vcmask 7168   ;;  %v109_v0 = vmov 0.0   ;;  %v28_v1 = vld [vmem:[#allocation3] sm:$0xff]  ;;  %v29_v2 = vld [vmem:[#allocation3 + $0x8] sm:$0xff] }
  0x13   :  { %26 = vst.msk [vmem:[#allocation2] sm:$0xff] %vm25_vm0, %v109_v0  ;;  %v30_v3 = vadd.f32 %v29_v2, %v28_v1  ;;  %s110_s18 = smov [#allocation6]  }
  0x14   :  { %s48_s19 = sshll.u32 %s110_s18, 4  ;;  %s49_s19 = int_to_ptr.vmem [resolvable:$true] %s48_s19 }
  0x15   :  { %31 = vadd.xlane.f32.xlu0 %v30_v3  ;;  %s82_s0 = scalar_lea.vmem %s49_s19, 128  ;;  %p87_p9 = scmp.lt.s32.totalorder %s49_s19, %s49_s19 }
  0x16   :  { %p83_p8 = scmp.ne.s32.totalorder %s49_s19, %s82_s0  ;;  %p88_p10 = scmp.lt.s32.totalorder %s82_s0, %s82_s0 }
  0x18   :  { %p89_p11 = por %p88_p10, %p87_p9 }
  0x1a   :  { %v27_v4 = vld [vmem:[#allocation2] sm:$0xff]  ;;  %p90_p12 = pnand %p89_p11, %p83_p8 }
  0xa2   :  { %v32_v5 = vpop.xlane.xlu0 %31 }
  0xa3   :  { %v33_v6 = vadd.f32 %v32_v5, %v27_v4 }
  0xa5   :  { %35 = vst.msk [vmem:[#allocation2] sm:$0xff] %vm25_vm0, %v33_v6 }
  0xac   :  { %v39_v7 = vld [vmem:[#allocation2] sm:$0xff] }
  0xad   :  { %v40_v8 = vmul.f32 0.00390625, %v39_v7 }
  0xaf   :  { %41 = vst.msk [vmem:[#allocation6] sm:$0xff] %vm25_vm0, %v40_v8 }
  0xb0   :  { %93 = shalt.err (!%p90_p12)
}
  0xb1   :  { %s94_s22 = scalar_lea.hbm %s149_s1, 128 }
  0xb2   :  { %p95_p13 = scmp.ne.s32.totalorder %s149_s1, %s94_s22  ;;  %p98_p0 = scmp.lt.u32.totalorder %s94_s22, %s149_s1 }
  0xb4   :  { %p100_p1 = pnand %p98_p0, %p95_p13 }
  0xb6   :  { %103 = shalt.err (!%p100_p1)
}
  0xb7   :  { %51 = dma.vmem_to_hbm [thread:$0]  %s49_s19, 128, %s149_s1, [#allocation5]  }
  0xb8   :  { %106 = dma.done.wait [#allocation5], 128  }
  0xb9   :  { %107 = vsyncadd [#allocation5], 4294967168 }
  0xba   :  { %55 = vsyncpa [#allocation4], 1 }
  0xbb   :  { %56 = vsyncpa [#allocation5], 1 }

</bundles_post_ra>
